<compile_context>
chip_gen: v7x
topology: tpu7x:2x2x1
jax: 0.10.0
libtpu: 0.0.40
codegen_flags: <defaults>
</compile_context>

<pallas_src>
import functools

import jax
import jax.numpy as jnp
import numpy as np
from jax.experimental import pallas as pl
from jax.experimental.pallas import tpu as pltpu

# ----------------------------- configuration -------------------------------
BATCH = 2
C_BEV, H_BEV, W_BEV = 4, 16, 16
FLATTEN = C_BEV * H_BEV * W_BEV        # flatten_dims = 1024
EMBED = 32                             # embed_dims == GRU hidden size
ACT = 8                                # action_dims
T_STEPS = 4                            # actions.shape[1]
HEADS, DIM_HEAD = 4, 8
INNER = HEADS * DIM_HEAD               # 32
DEC_IN = EMBED + ACT                   # decoder in_channels = 40
DEC_CH = (32, 16)                      # decoder MLP channels
EPS = 1e-5


def _layernorm(x, w, b):
    mu = jnp.mean(x, axis=-1, keepdims=True)
    var = jnp.mean((x - mu) ** 2, axis=-1, keepdims=True)
    return (x - mu) * jax.lax.rsqrt(var + EPS) * w + b


# ------------------------------ Pallas kernel -------------------------------
def _former_kernel(T, B, H, layout, x_ref, wlin_ref, act_ref, slab_ref, out_ref):
    # static slices into the packed parameter slab (offsets are Python ints,
    # every start is 8-sublane aligned -> cheap VMEM views)
    def p(name):
        r, nr, nc = layout[name]
        return slab_ref[r:r + nr, :nc]

    # ---- x = self.linear(flatten(latent_bev))  (self.silu is unused in forward) --
    x = jnp.dot(x_ref[...], wlin_ref[...],
                preferred_element_type=jnp.float32) + p("b_lin")          # (B, H)

    acts = act_ref[...]                    # (T*B, A) time-major; block 0 == zeros
    # ---- GRU driver for steps 1..T-1.
    # attn1/norm1/norm2 are algebraically dead (length-1 softmax -> attn2's output
    # depends only on its context).  attn2.to_v @ attn2.to_out @ GRU.W_ih (+biases)
    # are pre-folded into w_sg/b_sg, so one batched matmul produces every step's
    # GRU input gates at once.
    a_rec = acts[B:, :]                    # ((T-1)*B, A) == actions[:, :T-1]
    gi_all = jnp.dot(_layernorm(a_rec, p("n3_w"), p("n3_b")), p("w_sg"),
                     preferred_element_type=jnp.float32) + p("b_sg")      # ((T-1)*B, 3H)

    w_hh = p("w_hh")                       # hoisted out of the recurrence loop
    b_hh = p("b_hh")
    xs = [x]
    for t in range(T - 1):                 # tiny, statically unrolled recurrence
        gi = gi_all[t * B:(t + 1) * B, :]
        gh = jnp.dot(x, w_hh, preferred_element_type=jnp.float32) + b_hh  # (B, 3H)
        r = jax.nn.sigmoid(gi[:, :H] + gh[:, :H])
        z = jax.nn.sigmoid(gi[:, H:2 * H] + gh[:, H:2 * H])
        n = jnp.tanh(gi[:, 2 * H:] + r * gh[:, 2 * H:])
        x = (1.0 - z) * n + z * x
        xs.append(x)

    X = jnp.concatenate(xs, axis=0)        # (T*B, H), time-major, aligned with acts

    # ---- decoder, batched over all T timesteps at once:
    # LN -> (attn.to_v @ attn.to_out @ mlp0 fused) -> SiLU -> LN -> Linear -> SiLU
    d = jnp.concatenate([X, acts], axis=-1)                               # (T*B, H+A)
    h = _layernorm(d, p("d_ln1_w"), p("d_ln1_b"))
    h = jnp.dot(h, p("w_d1"), preferred_element_type=jnp.float32) + p("b_d1")
    h = h * jax.nn.sigmoid(h)
    h = _layernorm(h, p("d_ln2_w"), p("d_ln2_b"))
    h = jnp.dot(h, p("w_d2"), preferred_element_type=jnp.float32) + p("b_d2")
    h = h * jax.nn.sigmoid(h)
    out_ref[...] = h                        # (T*B, 16)


# ------------------------- parameter slab packing ---------------------------
def _pack_params(named, width=128):
    """Pack many small f32 params into one (R, width) slab, 8-sublane aligned."""
    layout, rows, r = {}, [], 0
    for name, arr in named:
        a = jnp.asarray(arr, jnp.float32)
        if a.ndim == 1:
            a = a[None, :]
        nr, nc = a.shape
        rows.append(jnp.pad(a, ((0, 0), (0, width - nc))))
        layout[name] = (r, nr, nc)
        r += nr
        pad = (-r) % 8                      # keep every start 8-sublane aligned
        if pad:
            rows.append(jnp.zeros((pad, width), jnp.float32))
            r += pad
    return jnp.concatenate(rows, axis=0), layout


# --------------------------------- wrapper ----------------------------------
@jax.jit
def actionformer5(latent_bev, actions, params):
    b, c, hh, ww = latent_bev.shape
    T = actions.shape[1]
    a_dim = actions.shape[-1]

    # rearrange 'b c h w -> b (h w) c' then reshape(b, -1)   (8 KiB, trivial)
    x_flat = jnp.transpose(latent_bev, (0, 2, 3, 1)).reshape(b, hh * ww * c)

    # action fed to the decoder at step t (zeros at t == 0), stacked time-major
    act_dec = jnp.concatenate([jnp.zeros_like(actions[:, :1]), actions[:, :T - 1]],
                              axis=1)                                     # (b, T, A)
    act_dec = jnp.transpose(act_dec, (1, 0, 2)).reshape(T * b, a_dim)     # (T*B, A)

    # ---- wrapper-side algebraic fusion (tiny one-off matmuls, fused under jit) ----
    w_sg = params["a2_wv"] @ params["a2_wo"] @ params["gru_w_ih"]         # (A, 3H)
    b_sg = params["a2_bo"] @ params["gru_w_ih"] + params["gru_b_ih"]      # (1, 3H)
    w_d1 = params["d_wv"] @ params["d_wo"] @ params["d_wm0"]              # (DEC_IN, 32)
    b_d1 = params["d_bo"] @ params["d_wm0"] + params["d_bm0"]             # (1, 32)

    slab, layout = _pack_params([
        ("b_lin", params["b_lin"]),
        ("n3_w", params["n3_w"]), ("n3_b", params["n3_b"]),
        ("w_sg", w_sg), ("b_sg", b_sg),
        ("w_hh", params["gru_w_hh"]), ("b_hh", params["gru_b_hh"]),
        ("d_ln1_w", params["d_ln1_w"]), ("d_ln1_b", params["d_ln1_b"]),
        ("w_d1", w_d1), ("b_d1", b_d1),
        ("d_ln2_w", params["d_ln2_w"]), ("d_ln2_b", params["d_ln2_b"]),
        ("w_d2", params["d_wm1"]), ("b_d2", params["d_bm1"]),
    ])

    kernel = functools.partial(_former_kernel, T, b, EMBED, layout)
    out = pl.pallas_call(
        kernel,
        out_shape=jax.ShapeDtypeStruct((T * b, DEC_CH[-1]), jnp.float32),
        in_specs=[pl.BlockSpec(memory_space=pltpu.MemorySpace.VMEM)] * 4,
        out_specs=pl.BlockSpec(memory_space=pltpu.MemorySpace.VMEM),
    )(x_flat, params["w_lin"], act_dec, slab)
    # axis 0 corresponds to the list `h` returned by the PyTorch forward
    return out.reshape(T, b, DEC_CH[-1])


# ------------------------------ parameter init -------------------------------
def init_params(key):
    keys = jax.random.split(key, 48)
    it = iter(keys)

    def rnd(shape, s=0.1):
        return (s * jax.random.normal(next(it), shape)).astype(jnp.float32)

    def ln(dim):
        return 1.0 + rnd((1, dim), 0.1), rnd((1, dim), 0.05)

    p = {}
    p["w_lin"], p["b_lin"] = rnd((FLATTEN, EMBED), 0.02), rnd((1, EMBED), 0.05)
    p["n1_w"], p["n1_b"] = ln(EMBED)           # dead in forward; used by reference
    p["n2_w"], p["n2_b"] = ln(EMBED)           # dead in forward; used by reference
    p["n3_w"], p["n3_b"] = ln(ACT)
    # attn1 (self-attn on embed) -- dead in forward; kept for the reference check
    p["a1_wq"], p["a1_wk"], p["a1_wv"] = rnd((EMBED, INNER)), rnd((EMBED, INNER)), rnd((EMBED, INNER))
    p["a1_wo"], p["a1_bo"] = rnd((INNER, EMBED)), rnd((1, EMBED), 0.05)
    # attn2 (query: embed, context: actions)
    p["a2_wq"] = rnd((EMBED, INNER))           # dead (len-1 softmax); reference only
    p["a2_wk"] = rnd((ACT, INNER))             # dead (len-1 softmax); reference only
    p["a2_wv"], p["a2_wo"], p["a2_bo"] = rnd((ACT, INNER)), rnd((INNER, EMBED)), rnd((1, EMBED), 0.05)
    # GRU (1 layer), weights pre-transposed to (in, 3H), gate order [r, z, n]
    p["gru_w_ih"], p["gru_b_ih"] = rnd((EMBED, 3 * EMBED)), rnd((1, 3 * EMBED), 0.05)
    p["gru_w_hh"], p["gru_b_hh"] = rnd((EMBED, 3 * EMBED)), rnd((1, 3 * EMBED), 0.05)
    # decoder: LN -> self CrossAttention (len-1) -> Linear+SiLU -> LN+Linear+SiLU
    p["d_ln1_w"], p["d_ln1_b"] = ln(DEC_IN)
    p["d_wq"], p["d_wk"], p["d_wv"] = rnd((DEC_IN, INNER)), rnd((DEC_IN, INNER)), rnd((DEC_IN, INNER))
    p["d_wo"], p["d_bo"] = rnd((INNER, DEC_IN)), rnd((1, DEC_IN), 0.05)
    p["d_wm0"], p["d_bm0"] = rnd((DEC_IN, DEC_CH[0])), rnd((1, DEC_CH[0]), 0.05)
    p["d_ln2_w"], p["d_ln2_b"] = ln(DEC_CH[0])
    p["d_wm1"], p["d_bm1"] = rnd((DEC_CH[0], DEC_CH[1])), rnd((1, DEC_CH[1]), 0.05)
    return p


# ---------------------- full, UNFUSED pure-JAX reference ---------------------
def _cross_attention_ref(q_in, ctx, wq, wk, wv, wo, bo):
    B, N, _ = q_in.shape
    M = ctx.shape[1]
    q = (q_in @ wq).reshape(B, N, HEADS, DIM_HEAD)
    k = (ctx @ wk).reshape(B, M, HEADS, DIM_HEAD)
    v = (ctx @ wv).reshape(B, M, HEADS, DIM_HEAD)
    sim = jnp.einsum("bihd,bjhd->bhij", q, k) * (DIM_HEAD ** -0.5)
    attn = jax.nn.softmax(sim, axis=-1)
    out = jnp.einsum("bhij,bjhd->bihd", attn, v).reshape(B, N, HEADS * DIM_HEAD)
    return out @ wo + bo                       # Dropout(p=0) == identity


def _decoder_ref(x, a, p):
    h = jnp.concatenate([x, a], axis=-1)[:, None, :]            # (b, 1, DEC_IN)
    h = _layernorm(h, p["d_ln1_w"], p["d_ln1_b"])
    h = _cross_attention_ref(h, h, p["d_wq"], p["d_wk"], p["d_wv"], p["d_wo"], p["d_bo"])
    h = h[:, 0]
    h = h @ p["d_wm0"] + p["d_bm0"]
    h = h * jax.nn.sigmoid(h)
    h = _layernorm(h, p["d_ln2_w"], p["d_ln2_b"])
    h = h @ p["d_wm1"] + p["d_bm1"]
    return h * jax.nn.sigmoid(h)


def _gru_step_ref(s, hx, p):
    H = EMBED
    gi = s @ p["gru_w_ih"] + p["gru_b_ih"]
    gh = hx @ p["gru_w_hh"] + p["gru_b_hh"]
    r = jax.nn.sigmoid(gi[:, :H] + gh[:, :H])
    z = jax.nn.sigmoid(gi[:, H:2 * H] + gh[:, H:2 * H])
    n = jnp.tanh(gi[:, 2 * H:] + r * gh[:, 2 * H:])
    return (1.0 - z) * n + z * hx


def reference(latent_bev, actions, p):
    b, c, hh, ww = latent_bev.shape
    T = actions.shape[1]
    x = jnp.transpose(latent_bev, (0, 2, 3, 1)).reshape(b, -1)
    x = x @ p["w_lin"] + p["b_lin"]
    outs = []
    for t in range(T):
        if t == 0:
            outs.append(_decoder_ref(x, jnp.zeros_like(actions[:, 0]), p))
        else:
            s = x[:, None, :]
            s_n1 = _layernorm(s, p["n1_w"], p["n1_b"])
            s = _cross_attention_ref(s_n1, s_n1, p["a1_wq"], p["a1_wk"], p["a1_wv"],
                                     p["a1_wo"], p["a1_bo"])
            ctx = _layernorm(actions[:, t - 1:t], p["n3_w"], p["n3_b"])
            s = _cross_attention_ref(_layernorm(s, p["n2_w"], p["n2_b"]), ctx,
                                     p["a2_wq"], p["a2_wk"], p["a2_wv"],
                                     p["a2_wo"], p["a2_bo"])
            x = _gru_step_ref(s[:, 0], x, p)
            outs.append(_decoder_ref(x, actions[:, t - 1], p))
    return jnp.stack(outs, axis=0)             # (T, b, 16)


# ----------------------------------- main ------------------------------------
if __name__ == "__main__":
    key = jax.random.PRNGKey(0)
    kb, ka, kp = jax.random.split(key, 3)
    latent_bev = jax.random.normal(kb, (BATCH, C_BEV, H_BEV, W_BEV), jnp.float32)
    actions = jax.random.normal(ka, (BATCH, T_STEPS, ACT), jnp.float32)
    params = init_params(kp)

    out = jax.block_until_ready(actionformer5(latent_bev, actions, params))
    ref = jax.block_until_ready(reference(latent_bev, actions, params))

    assert out.shape == (T_STEPS, BATCH, DEC_CH[-1]), out.shape
    np.testing.assert_allclose(np.asarray(out), np.asarray(ref), rtol=2e-2, atol=2e-2)
    print("KERNEL_OK")
</pallas_src>

<mosaic_0001>
module attributes {stable_mosaic.version = 11 : i64} {
  func.func @_former_kernel(%arg0: memref<2x1024xf32, #tpu.memory_space<vmem>>, %arg1: memref<1024x32xf32, #tpu.memory_space<vmem>>, %arg2: memref<8x8xf32, #tpu.memory_space<vmem>>, %arg3: memref<200x128xf32, #tpu.memory_space<vmem>>, %arg4: memref<8x16xf32, #tpu.memory_space<vmem>>) attributes {dimension_semantics = [], scalar_prefetch = 0 : i64, scratch_operands = 0 : i64, tpu.core_type = #tpu.core_type<tc>} {
    %c0 = arith.constant 0 : index
    %c0_0 = arith.constant 0 : index
    %0 = vector.load %arg0[%c0, %c0_0] : memref<2x1024xf32, #tpu.memory_space<vmem>>, vector<2x1024xf32>
    %c0_1 = arith.constant 0 : index
    %c0_2 = arith.constant 0 : index
    %1 = vector.load %arg1[%c0_1, %c0_2] : memref<1024x32xf32, #tpu.memory_space<vmem>>, vector<1024x32xf32>
    %cst = arith.constant dense<0.000000e+00> : vector<2x32xf32>
    %2 = tpu.matmul %0, %1, %cst {dimension_numbers = #tpu.dot_dimension_numbers<[1], [0], [0], [1], [0, 0, 1, 1], [], []>} : vector<2x1024xf32>, vector<1024x32xf32>, vector<2x32xf32> -> vector<2x32xf32>
    %c0_3 = arith.constant 0 : index
    %c0_4 = arith.constant 0 : index
    %3 = vector.load %arg3[%c0_3, %c0_4] : memref<200x128xf32, #tpu.memory_space<vmem>>, vector<1x32xf32>
    %4 = vector.broadcast %3 : vector<1x32xf32> to vector<2x32xf32>
    %5 = arith.addf %2, %4 : vector<2x32xf32>
    %c0_5 = arith.constant 0 : index
    %c0_6 = arith.constant 0 : index
    %6 = vector.load %arg2[%c0_5, %c0_6] : memref<8x8xf32, #tpu.memory_space<vmem>>, vector<8x8xf32>
    %7 = vector.extract_strided_slice %6 {offsets = [2, 0], sizes = [6, 8], strides = [1, 1]} : vector<8x8xf32> to vector<6x8xf32>
    %c8 = arith.constant 8 : index
    %c0_7 = arith.constant 0 : index
    %8 = vector.load %arg3[%c8, %c0_7] : memref<200x128xf32, #tpu.memory_space<vmem>>, vector<1x8xf32>
    %c16 = arith.constant 16 : index
    %c0_8 = arith.constant 0 : index
    %9 = vector.load %arg3[%c16, %c0_8] : memref<200x128xf32, #tpu.memory_space<vmem>>, vector<1x8xf32>
    %cst_9 = arith.constant dense<0.000000e+00> : vector<6xf32>
    %10 = vector.multi_reduction <add>, %7, %cst_9 [1] : vector<6x8xf32> to vector<6xf32>
    %11 = vector.shape_cast %10 : vector<6xf32> to vector<6x1xf32>
    %cst_10 = arith.constant 8.000000e+00 : f32
    %12 = vector.broadcast %cst_10 : f32 to vector<6x1xf32>
    %13 = arith.divf %11, %12 : vector<6x1xf32>
    %14 = vector.broadcast %13 : vector<6x1xf32> to vector<6x8xf32>
    %15 = arith.subf %7, %14 : vector<6x8xf32>
    %16 = arith.mulf %15, %15 : vector<6x8xf32>
    %cst_11 = arith.constant dense<0.000000e+00> : vector<6xf32>
    %17 = vector.multi_reduction <add>, %16, %cst_11 [1] : vector<6x8xf32> to vector<6xf32>
    %18 = vector.shape_cast %17 : vector<6xf32> to vector<6x1xf32>
    %cst_12 = arith.constant 8.000000e+00 : f32
    %19 = vector.broadcast %cst_12 : f32 to vector<6x1xf32>
    %20 = arith.divf %18, %19 : vector<6x1xf32>
    %21 = vector.broadcast %13 : vector<6x1xf32> to vector<6x8xf32>
    %22 = arith.subf %7, %21 : vector<6x8xf32>
    %cst_13 = arith.constant 9.99999974E-6 : f32
    %23 = vector.broadcast %cst_13 : f32 to vector<6x1xf32>
    %24 = arith.addf %20, %23 : vector<6x1xf32>
    %25 = math.rsqrt %24 : vector<6x1xf32>
    %26 = vector.broadcast %25 : vector<6x1xf32> to vector<6x8xf32>
    %27 = arith.mulf %22, %26 : vector<6x8xf32>
    %28 = vector.broadcast %8 : vector<1x8xf32> to vector<6x8xf32>
    %29 = arith.mulf %27, %28 : vector<6x8xf32>
    %30 = vector.broadcast %9 : vector<1x8xf32> to vector<6x8xf32>
    %31 = arith.addf %29, %30 : vector<6x8xf32>
    %c24 = arith.constant 24 : index
    %c0_14 = arith.constant 0 : index
    %32 = vector.load %arg3[%c24, %c0_14] : memref<200x128xf32, #tpu.memory_space<vmem>>, vector<8x96xf32>
    %cst_15 = arith.constant dense<0.000000e+00> : vector<6x96xf32>
    %33 = tpu.matmul %31, %32, %cst_15 {dimension_numbers = #tpu.dot_dimension_numbers<[1], [0], [0], [1], [0, 0, 1, 1], [], []>} : vector<6x8xf32>, vector<8x96xf32>, vector<6x96xf32> -> vector<6x96xf32>
    %c32 = arith.constant 32 : index
    %c0_16 = arith.constant 0 : index
    %34 = vector.load %arg3[%c32, %c0_16] : memref<200x128xf32, #tpu.memory_space<vmem>>, vector<1x96xf32>
    %35 = vector.broadcast %34 : vector<1x96xf32> to vector<6x96xf32>
    %36 = arith.addf %33, %35 : vector<6x96xf32>
    %c40 = arith.constant 40 : index
    %c0_17 = arith.constant 0 : index
    %37 = vector.load %arg3[%c40, %c0_17] : memref<200x128xf32, #tpu.memory_space<vmem>>, vector<32x96xf32>
    %c72 = arith.constant 72 : index
    %c0_18 = arith.constant 0 : index
    %38 = vector.load %arg3[%c72, %c0_18] : memref<200x128xf32, #tpu.memory_space<vmem>>, vector<1x96xf32>
    %39 = vector.extract_strided_slice %36 {offsets = [0, 0], sizes = [2, 96], strides = [1, 1]} : vector<6x96xf32> to vector<2x96xf32>
    %cst_19 = arith.constant dense<0.000000e+00> : vector<2x96xf32>
    %40 = tpu.matmul %5, %37, %cst_19 {dimension_numbers = #tpu.dot_dimension_numbers<[1], [0], [0], [1], [0, 0, 1, 1], [], []>} : vector<2x32xf32>, vector<32x96xf32>, vector<2x96xf32> -> vector<2x96xf32>
    %41 = vector.broadcast %38 : vector<1x96xf32> to vector<2x96xf32>
    %42 = arith.addf %40, %41 : vector<2x96xf32>
    %43 = vector.extract_strided_slice %39 {offsets = [0, 0], sizes = [2, 32], strides = [1, 1]} : vector<2x96xf32> to vector<2x32xf32>
    %44 = vector.extract_strided_slice %42 {offsets = [0, 0], sizes = [2, 32], strides = [1, 1]} : vector<2x96xf32> to vector<2x32xf32>
    %45 = arith.addf %43, %44 : vector<2x32xf32>
    %46 = arith.negf %45 : vector<2x32xf32>
    %47 = math.exp %46 : vector<2x32xf32>
    %cst_20 = arith.constant 1.000000e+00 : f32
    %48 = vector.broadcast %cst_20 : f32 to vector<2x32xf32>
    %49 = arith.addf %48, %47 : vector<2x32xf32>
    %50 = arith.divf %48, %49 : vector<2x32xf32>
    %51 = vector.extract_strided_slice %39 {offsets = [0, 32], sizes = [2, 32], strides = [1, 1]} : vector<2x96xf32> to vector<2x32xf32>
    %52 = vector.extract_strided_slice %42 {offsets = [0, 32], sizes = [2, 32], strides = [1, 1]} : vector<2x96xf32> to vector<2x32xf32>
    %53 = arith.addf %51, %52 : vector<2x32xf32>
    %54 = arith.negf %53 : vector<2x32xf32>
    %55 = math.exp %54 : vector<2x32xf32>
    %cst_21 = arith.constant 1.000000e+00 : f32
    %56 = vector.broadcast %cst_21 : f32 to vector<2x32xf32>
    %57 = arith.addf %56, %55 : vector<2x32xf32>
    %58 = arith.divf %56, %57 : vector<2x32xf32>
    %59 = vector.extract_strided_slice %39 {offsets = [0, 64], sizes = [2, 32], strides = [1, 1]} : vector<2x96xf32> to vector<2x32xf32>
    %60 = vector.extract_strided_slice %42 {offsets = [0, 64], sizes = [2, 32], strides = [1, 1]} : vector<2x96xf32> to vector<2x32xf32>
    %61 = arith.mulf %50, %60 : vector<2x32xf32>
    %62 = arith.addf %59, %61 : vector<2x32xf32>
    %63 = math.tanh %62 : vector<2x32xf32>
    %cst_22 = arith.constant 1.000000e+00 : f32
    %64 = vector.broadcast %cst_22 : f32 to vector<2x32xf32>
    %65 = arith.subf %64, %58 : vector<2x32xf32>
    %66 = arith.mulf %65, %63 : vector<2x32xf32>
    %67 = arith.mulf %58, %5 : vector<2x32xf32>
    %68 = arith.addf %66, %67 : vector<2x32xf32>
    %69 = vector.extract_strided_slice %36 {offsets = [2, 0], sizes = [2, 96], strides = [1, 1]} : vector<6x96xf32> to vector<2x96xf32>
    %cst_23 = arith.constant dense<0.000000e+00> : vector<2x96xf32>
    %70 = tpu.matmul %68, %37, %cst_23 {dimension_numbers = #tpu.dot_dimension_numbers<[1], [0], [0], [1], [0, 0, 1, 1], [], []>} : vector<2x32xf32>, vector<32x96xf32>, vector<2x96xf32> -> vector<2x96xf32>
    %71 = vector.broadcast %38 : vector<1x96xf32> to vector<2x96xf32>
    %72 = arith.addf %70, %71 : vector<2x96xf32>
    %73 = vector.extract_strided_slice %69 {offsets = [0, 0], sizes = [2, 32], strides = [1, 1]} : vector<2x96xf32> to vector<2x32xf32>
    %74 = vector.extract_strided_slice %72 {offsets = [0, 0], sizes = [2, 32], strides = [1, 1]} : vector<2x96xf32> to vector<2x32xf32>
    %75 = arith.addf %73, %74 : vector<2x32xf32>
    %76 = arith.negf %75 : vector<2x32xf32>
    %77 = math.exp %76 : vector<2x32xf32>
    %cst_24 = arith.constant 1.000000e+00 : f32
    %78 = vector.broadcast %cst_24 : f32 to vector<2x32xf32>
    %79 = arith.addf %78, %77 : vector<2x32xf32>
    %80 = arith.divf %78, %79 : vector<2x32xf32>
    %81 = vector.extract_strided_slice %69 {offsets = [0, 32], sizes = [2, 32], strides = [1, 1]} : vector<2x96xf32> to vector<2x32xf32>
    %82 = vector.extract_strided_slice %72 {offsets = [0, 32], sizes = [2, 32], strides = [1, 1]} : vector<2x96xf32> to vector<2x32xf32>
    %83 = arith.addf %81, %82 : vector<2x32xf32>
    %84 = arith.negf %83 : vector<2x32xf32>
    %85 = math.exp %84 : vector<2x32xf32>
    %cst_25 = arith.constant 1.000000e+00 : f32
    %86 = vector.broadcast %cst_25 : f32 to vector<2x32xf32>
    %87 = arith.addf %86, %85 : vector<2x32xf32>
    %88 = arith.divf %86, %87 : vector<2x32xf32>
    %89 = vector.extract_strided_slice %69 {offsets = [0, 64], sizes = [2, 32], strides = [1, 1]} : vector<2x96xf32> to vector<2x32xf32>
    %90 = vector.extract_strided_slice %72 {offsets = [0, 64], sizes = [2, 32], strides = [1, 1]} : vector<2x96xf32> to vector<2x32xf32>
    %91 = arith.mulf %80, %90 : vector<2x32xf32>
    %92 = arith.addf %89, %91 : vector<2x32xf32>
    %93 = math.tanh %92 : vector<2x32xf32>
    %cst_26 = arith.constant 1.000000e+00 : f32
    %94 = vector.broadcast %cst_26 : f32 to vector<2x32xf32>
    %95 = arith.subf %94, %88 : vector<2x32xf32>
    %96 = arith.mulf %95, %93 : vector<2x32xf32>
    %97 = arith.mulf %88, %68 : vector<2x32xf32>
    %98 = arith.addf %96, %97 : vector<2x32xf32>
    %99 = vector.extract_strided_slice %36 {offsets = [4, 0], sizes = [2, 96], strides = [1, 1]} : vector<6x96xf32> to vector<2x96xf32>
    %cst_27 = arith.constant dense<0.000000e+00> : vector<2x96xf32>
    %100 = tpu.matmul %98, %37, %cst_27 {dimension_numbers = #tpu.dot_dimension_numbers<[1], [0], [0], [1], [0, 0, 1, 1], [], []>} : vector<2x32xf32>, vector<32x96xf32>, vector<2x96xf32> -> vector<2x96xf32>
    %101 = vector.broadcast %38 : vector<1x96xf32> to vector<2x96xf32>
    %102 = arith.addf %100, %101 : vector<2x96xf32>
    %103 = vector.extract_strided_slice %99 {offsets = [0, 0], sizes = [2, 32], strides = [1, 1]} : vector<2x96xf32> to vector<2x32xf32>
    %104 = vector.extract_strided_slice %102 {offsets = [0, 0], sizes = [2, 32], strides = [1, 1]} : vector<2x96xf32> to vector<2x32xf32>
    %105 = arith.addf %103, %104 : vector<2x32xf32>
    %106 = arith.negf %105 : vector<2x32xf32>
    %107 = math.exp %106 : vector<2x32xf32>
    %cst_28 = arith.constant 1.000000e+00 : f32
    %108 = vector.broadcast %cst_28 : f32 to vector<2x32xf32>
    %109 = arith.addf %108, %107 : vector<2x32xf32>
    %110 = arith.divf %108, %109 : vector<2x32xf32>
    %111 = vector.extract_strided_slice %99 {offsets = [0, 32], sizes = [2, 32], strides = [1, 1]} : vector<2x96xf32> to vector<2x32xf32>
    %112 = vector.extract_strided_slice %102 {offsets = [0, 32], sizes = [2, 32], strides = [1, 1]} : vector<2x96xf32> to vector<2x32xf32>
    %113 = arith.addf %111, %112 : vector<2x32xf32>
    %114 = arith.negf %113 : vector<2x32xf32>
    %115 = math.exp %114 : vector<2x32xf32>
    %cst_29 = arith.constant 1.000000e+00 : f32
    %116 = vector.broadcast %cst_29 : f32 to vector<2x32xf32>
    %117 = arith.addf %116, %115 : vector<2x32xf32>
    %118 = arith.divf %116, %117 : vector<2x32xf32>
    %119 = vector.extract_strided_slice %99 {offsets = [0, 64], sizes = [2, 32], strides = [1, 1]} : vector<2x96xf32> to vector<2x32xf32>
    %120 = vector.extract_strided_slice %102 {offsets = [0, 64], sizes = [2, 32], strides = [1, 1]} : vector<2x96xf32> to vector<2x32xf32>
    %121 = arith.mulf %110, %120 : vector<2x32xf32>
    %122 = arith.addf %119, %121 : vector<2x32xf32>
    %123 = math.tanh %122 : vector<2x32xf32>
    %cst_30 = arith.constant 1.000000e+00 : f32
    %124 = vector.broadcast %cst_30 : f32 to vector<2x32xf32>
    %125 = arith.subf %124, %118 : vector<2x32xf32>
    %126 = arith.mulf %125, %123 : vector<2x32xf32>
    %127 = arith.mulf %118, %98 : vector<2x32xf32>
    %128 = arith.addf %126, %127 : vector<2x32xf32>
    %129 = tpu.concatenate %5, %68, %98, %128 in 0 : vector<2x32xf32>, vector<2x32xf32>, vector<2x32xf32>, vector<2x32xf32> -> vector<8x32xf32>
    %130 = tpu.concatenate %129, %6 in 1 : vector<8x32xf32>, vector<8x8xf32> -> vector<8x40xf32>
    %c80 = arith.constant 80 : index
    %c0_31 = arith.constant 0 : index
    %131 = vector.load %arg3[%c80, %c0_31] : memref<200x128xf32, #tpu.memory_space<vmem>>, vector<1x40xf32>
    %c88 = arith.constant 88 : index
    %c0_32 = arith.constant 0 : index
    %132 = vector.load %arg3[%c88, %c0_32] : memref<200x128xf32, #tpu.memory_space<vmem>>, vector<1x40xf32>
    %cst_33 = arith.constant dense<0.000000e+00> : vector<8xf32>
    %133 = vector.multi_reduction <add>, %130, %cst_33 [1] : vector<8x40xf32> to vector<8xf32>
    %134 = vector.shape_cast %133 : vector<8xf32> to vector<8x1xf32>
    %cst_34 = arith.constant 4.000000e+01 : f32
    %135 = vector.broadcast %cst_34 : f32 to vector<8x1xf32>
    %136 = arith.divf %134, %135 : vector<8x1xf32>
    %137 = vector.broadcast %136 : vector<8x1xf32> to vector<8x40xf32>
    %138 = arith.subf %130, %137 : vector<8x40xf32>
    %139 = arith.mulf %138, %138 : vector<8x40xf32>
    %cst_35 = arith.constant dense<0.000000e+00> : vector<8xf32>
    %140 = vector.multi_reduction <add>, %139, %cst_35 [1] : vector<8x40xf32> to vector<8xf32>
    %141 = vector.shape_cast %140 : vector<8xf32> to vector<8x1xf32>
    %cst_36 = arith.constant 4.000000e+01 : f32
    %142 = vector.broadcast %cst_36 : f32 to vector<8x1xf32>
    %143 = arith.divf %141, %142 : vector<8x1xf32>
    %144 = vector.broadcast %136 : vector<8x1xf32> to vector<8x40xf32>
    %145 = arith.subf %130, %144 : vector<8x40xf32>
    %cst_37 = arith.constant 9.99999974E-6 : f32
    %146 = vector.broadcast %cst_37 : f32 to vector<8x1xf32>
    %147 = arith.addf %143, %146 : vector<8x1xf32>
    %148 = math.rsqrt %147 : vector<8x1xf32>
    %149 = vector.broadcast %148 : vector<8x1xf32> to vector<8x40xf32>
    %150 = arith.mulf %145, %149 : vector<8x40xf32>
    %151 = vector.broadcast %131 : vector<1x40xf32> to vector<8x40xf32>
    %152 = arith.mulf %150, %151 : vector<8x40xf32>
    %153 = vector.broadcast %132 : vector<1x40xf32> to vector<8x40xf32>
    %154 = arith.addf %152, %153 : vector<8x40xf32>
    %c96 = arith.constant 96 : index
    %c0_38 = arith.constant 0 : index
    %155 = vector.load %arg3[%c96, %c0_38] : memref<200x128xf32, #tpu.memory_space<vmem>>, vector<40x32xf32>
    %cst_39 = arith.constant dense<0.000000e+00> : vector<8x32xf32>
    %156 = tpu.matmul %154, %155, %cst_39 {dimension_numbers = #tpu.dot_dimension_numbers<[1], [0], [0], [1], [0, 0, 1, 1], [], []>} : vector<8x40xf32>, vector<40x32xf32>, vector<8x32xf32> -> vector<8x32xf32>
    %c136 = arith.constant 136 : index
    %c0_40 = arith.constant 0 : index
    %157 = vector.load %arg3[%c136, %c0_40] : memref<200x128xf32, #tpu.memory_space<vmem>>, vector<1x32xf32>
    %158 = vector.broadcast %157 : vector<1x32xf32> to vector<8x32xf32>
    %159 = arith.addf %156, %158 : vector<8x32xf32>
    %160 = arith.negf %159 : vector<8x32xf32>
    %161 = math.exp %160 : vector<8x32xf32>
    %cst_41 = arith.constant 1.000000e+00 : f32
    %162 = vector.broadcast %cst_41 : f32 to vector<8x32xf32>
    %163 = arith.addf %162, %161 : vector<8x32xf32>
    %164 = arith.divf %162, %163 : vector<8x32xf32>
    %165 = arith.mulf %159, %164 : vector<8x32xf32>
    %c144 = arith.constant 144 : index
    %c0_42 = arith.constant 0 : index
    %166 = vector.load %arg3[%c144, %c0_42] : memref<200x128xf32, #tpu.memory_space<vmem>>, vector<1x32xf32>
    %c152 = arith.constant 152 : index
    %c0_43 = arith.constant 0 : index
    %167 = vector.load %arg3[%c152, %c0_43] : memref<200x128xf32, #tpu.memory_space<vmem>>, vector<1x32xf32>
    %cst_44 = arith.constant dense<0.000000e+00> : vector<8xf32>
    %168 = vector.multi_reduction <add>, %165, %cst_44 [1] : vector<8x32xf32> to vector<8xf32>
    %169 = vector.shape_cast %168 : vector<8xf32> to vector<8x1xf32>
    %cst_45 = arith.constant 3.200000e+01 : f32
    %170 = vector.broadcast %cst_45 : f32 to vector<8x1xf32>
    %171 = arith.divf %169, %170 : vector<8x1xf32>
    %172 = vector.broadcast %171 : vector<8x1xf32> to vector<8x32xf32>
    %173 = arith.subf %165, %172 : vector<8x32xf32>
    %174 = arith.mulf %173, %173 : vector<8x32xf32>
    %cst_46 = arith.constant dense<0.000000e+00> : vector<8xf32>
    %175 = vector.multi_reduction <add>, %174, %cst_46 [1] : vector<8x32xf32> to vector<8xf32>
    %176 = vector.shape_cast %175 : vector<8xf32> to vector<8x1xf32>
    %cst_47 = arith.constant 3.200000e+01 : f32
    %177 = vector.broadcast %cst_47 : f32 to vector<8x1xf32>
    %178 = arith.divf %176, %177 : vector<8x1xf32>
    %179 = vector.broadcast %171 : vector<8x1xf32> to vector<8x32xf32>
    %180 = arith.subf %165, %179 : vector<8x32xf32>
    %cst_48 = arith.constant 9.99999974E-6 : f32
    %181 = vector.broadcast %cst_48 : f32 to vector<8x1xf32>
    %182 = arith.addf %178, %181 : vector<8x1xf32>
    %183 = math.rsqrt %182 : vector<8x1xf32>
    %184 = vector.broadcast %183 : vector<8x1xf32> to vector<8x32xf32>
    %185 = arith.mulf %180, %184 : vector<8x32xf32>
    %186 = vector.broadcast %166 : vector<1x32xf32> to vector<8x32xf32>
    %187 = arith.mulf %185, %186 : vector<8x32xf32>
    %188 = vector.broadcast %167 : vector<1x32xf32> to vector<8x32xf32>
    %189 = arith.addf %187, %188 : vector<8x32xf32>
    %c160 = arith.constant 160 : index
    %c0_49 = arith.constant 0 : index
    %190 = vector.load %arg3[%c160, %c0_49] : memref<200x128xf32, #tpu.memory_space<vmem>>, vector<32x16xf32>
    %cst_50 = arith.constant dense<0.000000e+00> : vector<8x16xf32>
    %191 = tpu.matmul %189, %190, %cst_50 {dimension_numbers = #tpu.dot_dimension_numbers<[1], [0], [0], [1], [0, 0, 1, 1], [], []>} : vector<8x32xf32>, vector<32x16xf32>, vector<8x16xf32> -> vector<8x16xf32>
    %c192 = arith.constant 192 : index
    %c0_51 = arith.constant 0 : index
    %192 = vector.load %arg3[%c192, %c0_51] : memref<200x128xf32, #tpu.memory_space<vmem>>, vector<1x16xf32>
    %193 = vector.broadcast %192 : vector<1x16xf32> to vector<8x16xf32>
    %194 = arith.addf %191, %193 : vector<8x16xf32>
    %195 = arith.negf %194 : vector<8x16xf32>
    %196 = math.exp %195 : vector<8x16xf32>
    %cst_52 = arith.constant 1.000000e+00 : f32
    %197 = vector.broadcast %cst_52 : f32 to vector<8x16xf32>
    %198 = arith.addf %197, %196 : vector<8x16xf32>
    %199 = arith.divf %197, %198 : vector<8x16xf32>
    %200 = arith.mulf %194, %199 : vector<8x16xf32>
    %c0_53 = arith.constant 0 : index
    %c0_54 = arith.constant 0 : index
    %201 = vector.load %arg4[%c0_53, %c0_54] : memref<8x16xf32, #tpu.memory_space<vmem>>, vector<8x16xf32>
    tpu.vector_store %arg4[%c0_53, %c0_54], %200 {strides = array<i32>} : memref<8x16xf32, #tpu.memory_space<vmem>>, vector<8x16xf32>,
    return
  }
}

</mosaic_0001>

<bundles_post_ra>
// kernel: actionformer5.1
= control target key start
LH: loop header
LB: loop body
LE: loop exit
PB: predicated region body
PF: predicated region fallthrough
CT: control target
= control target key end

     0   :  { %vm480_vm0 = vcmask 64514   ;;  %v1655_v46 = vmov 1983009808   ;;  %v159_v48 = vlaneseq  ;;  %s2254_s0 = inlined_call_operand.vmem [shape: f32[2,1024], index: 0, kind: input, shape index: {}]   ;;  %s2255_s1 = inlined_call_operand.vmem [shape: f32[1024,32], index: 1, kind: input, shape index: {}]   ;;  %s2256_s2 = inlined_call_operand.vmem [shape: f32[8,8], index: 2, kind: input, shape index: {}]   ;;  %s2257_s3 = inlined_call_operand.vmem [shape: f32[200,128], index: 3, kind: input, shape index: {}]   ;;  %s2258_s4 = inlined_call_operand.hbm [shape: f32[8,16], index: 4, kind: output, shape index: {}]  }
   0x1   :  { %v1691_v0 = vld [vmem:[%s2256_s2] sm:$0xff]  ;;  %v37_v2 = vld [vmem:[%s2255_s1 + $0x88] sm:$0xff]  ;;  %v38_v14 = vld [vmem:[%s2255_s1 + $0x90] sm:$0xff]  ;;  %v157_v47 = vunpack.c.l.s4 %v1655_v46 }
   0x2   :  { %v36_v1 = vld [vmem:[%s2255_s1 + $0x80] sm:$0xff]  ;;  %v481_v3 = vsel %vm480_vm0, %v1691_v0, 0.0  ;;  %v21_v6 = vld [vmem:[%s2255_s1 + $0x8] sm:$0xff]  ;;  %v39_v15 = vld [vmem:[%s2255_s1 + $0x98] sm:$0xff]  ;;  %v160_v63 = vshrl.u32 %v159_v48, 7 }
   0x3   :  { %v1431_v4 = vpack.c.bf16 %v37_v2, %v36_v1  ;;  %v20_v5 = vld [vmem:[%s2255_s1] sm:$0xff]  ;;  %482 = vadd.xlane.f32.xlu0 %v481_v3  ;;  %v69_v9 = vld [vmem:[%s2255_s1 + $0x188] sm:$0xff]  ;;  %v22_v16 = vld [vmem:[%s2255_s1 + $0x10] sm:$0xff]  ;;  %v1435_v17 = vpack.c.bf16 %v39_v15, %v38_v14  ;;  %v158_v62 = vunpack.c.0.s8 %v157_v47 }
   0x4   :  { %v68_v7 = vld [vmem:[%s2255_s1 + $0x180] sm:$0xff]  ;;  %v1433_v8 = vpack.c.bf16 %v21_v6, %v20_v5  ;;  %v53_v11 = vld [vmem:[%s2255_s1 + $0x108] sm:$0xff]  ;;  %v23_v18 = vld [vmem:[%s2255_s1 + $0x18] sm:$0xff] }
   0x5   :  { %v52_v10 = vld [vmem:[%s2255_s1 + $0x100] sm:$0xff]  ;;  %1432 = vmatprep.subr.bf16.mxu0 %v1431_v4  ;;  %v1463_v12 = vpack.c.bf16 %v69_v9, %v68_v7  ;;  %v70_v19 = vld [vmem:[%s2255_s1 + $0x190] sm:$0xff]  ;;  %v71_v20 = vld [vmem:[%s2255_s1 + $0x198] sm:$0xff]  ;;  %v1437_v21 = vpack.c.bf16 %v23_v18, %v22_v16 }
   0x6   :  { %v1465_v13 = vpack.c.bf16 %v53_v11, %v52_v10  ;;  %1434 = vmatpush3.bf16.msra.mxu0 %v1433_v8  ;;  %v1467_v22 = vpack.c.bf16 %v71_v20, %v70_v19  ;;  %v54_v23 = vld [vmem:[%s2255_s1 + $0x110] sm:$0xff]  ;;  %v55_v24 = vld [vmem:[%s2255_s1 + $0x118] sm:$0xff]  ;;  %v40_v25 = vld [vmem:[%s2255_s1 + $0xa0] sm:$0xff] }
   0x7   :  { %1464 = vmatprep.subr.bf16.mxu1 %v1463_v12  ;;  %1436 = vmatprep.subr.bf16.mxu0 %v1435_v17  ;;  %v1469_v26 = vpack.c.bf16 %v55_v24, %v54_v23  ;;  %v41_v27 = vld [vmem:[%s2255_s1 + $0xa8] sm:$0xff]  ;;  %v24_v28 = vld [vmem:[%s2255_s1 + $0x20] sm:$0xff]  ;;  %v42_v37 = vld [vmem:[%s2255_s1 + $0xb0] sm:$0xff] }
   0x8   :  { %1466 = vmatpush3.bf16.msra.mxu1 %v1465_v13  ;;  %v25_v29 = vld [vmem:[%s2255_s1 + $0x28] sm:$0xff]  ;;  %v1439_v30 = vpack.c.bf16 %v41_v27, %v40_v25  ;;  %v72_v31 = vld [vmem:[%s2255_s1 + $0x1a0] sm:$0xff]  ;;  %v43_v38 = vld [vmem:[%s2255_s1 + $0xb8] sm:$0xff]  ;;  %v1839_v13 = vsub.s32 %v158_v62, %v160_v63 }
   0x9   :  { %1468 = vmatprep.subr.bf16.mxu1 %v1467_v22  ;;  %v73_v32 = vld [vmem:[%s2255_s1 + $0x1a8] sm:$0xff]  ;;  %v56_v33 = vld [vmem:[%s2255_s1 + $0x120] sm:$0xff]  ;;  %v1441_v34 = vpack.c.bf16 %v25_v29, %v24_v28  ;;  %v1443_v39 = vpack.c.bf16 %v43_v38, %v42_v37  ;;  %v26_v40 = vld [vmem:[%s2255_s1 + $0x30] sm:$0xff] }
   0xa   :  { %1438 = vmatpush3.bf16.msra.mxu0 %v1437_v21  ;;  %v1471_v35 = vpack.c.bf16 %v73_v32, %v72_v31  ;;  %v57_v36 = vld [vmem:[%s2255_s1 + $0x128] sm:$0xff]  ;;  %v27_v41 = vld [vmem:[%s2255_s1 + $0x38] sm:$0xff]  ;;  %v74_v42 = vld [vmem:[%s2255_s1 + $0x1b0] sm:$0xff] }
   0xb   :  { %1440 = vmatprep.subr.bf16.mxu0 %v1439_v30  ;;  %v1473_v43 = vpack.c.bf16 %v57_v36, %v56_v33  ;;  %v75_v44 = vld [vmem:[%s2255_s1 + $0x1b8] sm:$0xff]  ;;  %v58_v45 = vld [vmem:[%s2255_s1 + $0x130] sm:$0xff]  ;;  %v44_v51 = vld [vmem:[%s2255_s1 + $0xc0] sm:$0xff]  ;;  %v1445_v53 = vpack.c.bf16 %v27_v41, %v26_v40 }
   0xc   :  { %1470 = vmatpush3.bf16.msra.mxu1 %v1469_v26  ;;  %v1475_v49 = vpack.c.bf16 %v75_v44, %v74_v42  ;;  %v59_v50 = vld [vmem:[%s2255_s1 + $0x138] sm:$0xff]  ;;  %v45_v52 = vld [vmem:[%s2255_s1 + $0xc8] sm:$0xff]  ;;  %v76_v54 = vld [vmem:[%s2255_s1 + $0x1c0] sm:$0xff] }
   0xd   :  { %1472 = vmatprep.subr.bf16.mxu1 %v1471_v35  ;;  %v77_v55 = vld [vmem:[%s2255_s1 + $0x1c8] sm:$0xff]  ;;  %v1447_v56 = vpack.c.bf16 %v45_v52, %v44_v51  ;;  %v28_v57 = vld [vmem:[%s2255_s1 + $0x40] sm:$0xff]  ;;  %v1477_v59 = vpack.c.bf16 %v59_v50, %v58_v45  ;;  %v46_v60 = vld [vmem:[%s2255_s1 + $0xd0] sm:$0xff] }
   0xe   :  { %1442 = vmatpush3.bf16.msra.mxu0 %v1441_v34  ;;  %v29_v58 = vld [vmem:[%s2255_s1 + $0x48] sm:$0xff]  ;;  %v47_v61 = vld [vmem:[%s2255_s1 + $0xd8] sm:$0xff]  ;;  %v1479_v1 = vpack.c.bf16 %v77_v55, %v76_v54  ;;  %v60_v2 = vld [vmem:[%s2255_s1 + $0x140] sm:$0xff] }
   0xf   :  { %1444 = vmatprep.subr.bf16.mxu0 %v1443_v39  ;;  %v61_v3 = vld [vmem:[%s2255_s1 + $0x148] sm:$0xff]  ;;  %v1449_v4 = vpack.c.bf16 %v29_v58, %v28_v57  ;;  %v78_v5 = vld [vmem:[%s2255_s1 + $0x1d0] sm:$0xff]  ;;  %v79_v6 = vld [vmem:[%s2255_s1 + $0x1d8] sm:$0xff]  ;;  %v1451_v7 = vpack.c.bf16 %v47_v61, %v46_v60 }
  0x10   :  { %1474 = vmatpush3.bf16.msra.mxu1 %v1473_v43  ;;  %v30_v8 = vld [vmem:[%s2255_s1 + $0x50] sm:$0xff]  ;;  %v31_v9 = vld [vmem:[%s2255_s1 + $0x58] sm:$0xff]  ;;  %v1481_v10 = vpack.c.bf16 %v61_v3, %v60_v2  ;;  %v48_v11 = vld [vmem:[%s2255_s1 + $0xe0] sm:$0xff]  ;;  %v1483_v14 = vpack.c.bf16 %v79_v6, %v78_v5 }
  0x11   :  { %1476 = vmatprep.subr.bf16.mxu1 %v1475_v49  ;;  %v49_v12 = vld [vmem:[%s2255_s1 + $0xe8] sm:$0xff]  ;;  %v62_v15 = vld [vmem:[%s2255_s1 + $0x150] sm:$0xff]  ;;  %v63_v16 = vld [vmem:[%s2255_s1 + $0x158] sm:$0xff]  ;;  %v1453_v17 = vpack.c.bf16 %v31_v9, %v30_v8 }
  0x12   :  { %1446 = vmatpush3.bf16.msra.mxu0 %v1445_v53  ;;  %v80_v18 = vld [vmem:[%s2255_s1 + $0x1e0] sm:$0xff]  ;;  %v81_v19 = vld [vmem:[%s2255_s1 + $0x1e8] sm:$0xff]  ;;  %v1455_v20 = vpack.c.bf16 %v49_v12, %v48_v11  ;;  %v1485_v24 = vpack.c.bf16 %v63_v16, %v62_v15  ;;  %v50_v25 = vld [vmem:[%s2255_s1 + $0xf0] sm:$0xff] }
  0x13   :  { %1448 = vmatprep.subr.bf16.mxu0 %v1447_v56  ;;  %v32_v21 = vld [vmem:[%s2255_s1 + $0x60] sm:$0xff]  ;;  %v33_v22 = vld [vmem:[%s2255_s1 + $0x68] sm:$0xff]  ;;  %v51_v26 = vld [vmem:[%s2255_s1 + $0xf8] sm:$0xff]  ;;  %v1487_v29 = vpack.c.bf16 %v81_v19, %v80_v18 }
  0x14   :  { %1478 = vmatpush3.bf16.msra.mxu1 %v1477_v59  ;;  %v18_v23 = vld [vmem:[%s2254_s0] sm:$0xff]  ;;  %v65_v31 = vld [vmem:[%s2255_s1 + $0x168] sm:$0xff]  ;;  %v1457_v32 = vpack.c.bf16 %v33_v22, %v32_v21  ;;  %v82_v33 = vld [vmem:[%s2255_s1 + $0x1f0] sm:$0xff]  ;;  %v1459_v37 = vpack.c.bf16 %v51_v26, %v50_v25 }
  0x15   :  { %1480 = vmatprep.subr.bf16.mxu1 %v1479_v1  ;;  %v162_v27 = vrot.slane %v18_v23, %v1839_v13  ;;  %v155_v28 = vcombine.high %v18_v23, %v18_v23  ;;  %v64_v30 = vld [vmem:[%s2255_s1 + $0x160] sm:$0xff]  ;;  %v83_v34 = vld [vmem:[%s2255_s1 + $0x1f8] sm:$0xff]  ;;  %v34_v38 = vld [vmem:[%s2255_s1 + $0x70] sm:$0xff] }
  0x16   :  { %1450 = vmatpush3.bf16.msra.mxu0 %v1449_v4  ;;  %v35_v39 = vld [vmem:[%s2255_s1 + $0x78] sm:$0xff]  ;;  %v1489_v40 = vpack.c.bf16 %v65_v31, %v64_v30  ;;  %v100_v41 = vld [vmem:[%s2255_s1 + $0x280] sm:$0xff]  ;;  %v101_v42 = vld [vmem:[%s2255_s1 + $0x288] sm:$0xff]  ;;  %v1491_v44 = vpack.c.bf16 %v83_v34, %v82_v33 }
  0x17   :  { %1452 = vmatprep.subr.bf16.mxu0 %v1451_v7  ;;  %v170_v35 = vcombine.high %v162_v27, %v162_v27  ;;  %v169_v36 = vrot.slane %v155_v28, %v1839_v13  ;;  %v66_v45 = vld [vmem:[%s2255_s1 + $0x170] sm:$0xff]  ;;  %v67_v46 = vld [vmem:[%s2255_s1 + $0x178] sm:$0xff]  ;;  %v1461_v47 = vpack.c.bf16 %v35_v39, %v34_v38  ;;  %v132_v48 = vld [vmem:[%s2255_s1 + $0x380] sm:$0xff]  ;;  %v1495_v50 = vpack.c.bf16 %v101_v42, %v100_v41 }
  0x18   :  { %1482 = vmatpush3.bf16.msra.mxu1 %v1481_v10  ;;  %v133_v49 = vld [vmem:[%s2255_s1 + $0x388] sm:$0xff]  ;;  %v84_v51 = vld [vmem:[%s2255_s1 + $0x200] sm:$0xff]  ;;  %v1493_v53 = vpack.c.bf16 %v67_v46, %v66_v45  ;;  %v102_v54 = vld [vmem:[%s2255_s1 + $0x290] sm:$0xff] }
  0x19   :  { %1484 = vmatprep.subr.bf16.mxu1 %v1483_v14  ;;  %261 = vmatprep.mubr.f32.mxu0 %v170_v35  ;;  %v171_v43 = vcombine.high %v169_v36, %v169_v36  ;;  %v85_v52 = vld [vmem:[%s2255_s1 + $0x208] sm:$0xff]  ;;  %v103_v55 = vld [vmem:[%s2255_s1 + $0x298] sm:$0xff]  ;;  %v1527_v56 = vpack.c.bf16 %v133_v49, %v132_v48  ;;  %v116_v57 = vld [vmem:[%s2255_s1 + $0x300] sm:$0xff] }
  0x1a   :  { %1454 = vmatpush3.bf16.msra.mxu0 %v1453_v17  ;;  %v117_v58 = vld [vmem:[%s2255_s1 + $0x308] sm:$0xff]  ;;  %v1497_v59 = vpack.c.bf16 %v85_v52, %v84_v51  ;;  %v134_v60 = vld [vmem:[%s2255_s1 + $0x390] sm:$0xff]  ;;  %v135_v61 = vld [vmem:[%s2255_s1 + $0x398] sm:$0xff]  ;;  %v1499_v62 = vpack.c.bf16 %v103_v55, %v102_v54 }
  0x1b   :  { %1456 = vmatprep.subr.bf16.mxu0 %v1455_v20  ;;  %331 = vmatprep.mubr.f32.mxu1 %v171_v43  ;;  %v86_v63 = vld [vmem:[%s2255_s1 + $0x210] sm:$0xff]  ;;  %v87_v1 = vld [vmem:[%s2255_s1 + $0x218] sm:$0xff]  ;;  %v1529_v2 = vpack.c.bf16 %v117_v58, %v116_v57  ;;  %v104_v3 = vld [vmem:[%s2255_s1 + $0x2a0] sm:$0xff]  ;;  %v1531_v5 = vpack.c.bf16 %v135_v61, %v134_v60 }
  0x1c   :  { %1486 = vmatpush3.bf16.msra.mxu1 %v1485_v24  ;;  %v105_v4 = vld [vmem:[%s2255_s1 + $0x2a8] sm:$0xff]  ;;  %v118_v6 = vld [vmem:[%s2255_s1 + $0x310] sm:$0xff]  ;;  %v119_v7 = vld [vmem:[%s2255_s1 + $0x318] sm:$0xff]  ;;  %v1501_v8 = vpack.c.bf16 %v87_v1, %v86_v63 }
  0x1d   :  { %1488 = vmatprep.subr.bf16.mxu1 %v1487_v29  ;;  %v136_v9 = vld [vmem:[%s2255_s1 + $0x3a0] sm:$0xff]  ;;  %v137_v10 = vld [vmem:[%s2255_s1 + $0x3a8] sm:$0xff]  ;;  %v1503_v11 = vpack.c.bf16 %v105_v4, %v104_v3  ;;  %v1533_v15 = vpack.c.bf16 %v119_v7, %v118_v6  ;;  %v106_v16 = vld [vmem:[%s2255_s1 + $0x2b0] sm:$0xff] }
  0x1e   :  { %1458 = vmatpush3.bf16.msra.mxu0 %v1457_v32  ;;  %v88_v12 = vld [vmem:[%s2255_s1 + $0x220] sm:$0xff]  ;;  %v89_v14 = vld [vmem:[%s2255_s1 + $0x228] sm:$0xff]  ;;  %v107_v17 = vld [vmem:[%s2255_s1 + $0x2b8] sm:$0xff]  ;;  %v1535_v18 = vpack.c.bf16 %v137_v10, %v136_v9 }
  0x1f   :  { %1460 = vmatprep.subr.bf16.mxu0 %v1459_v37  ;;  %v120_v19 = vld [vmem:[%s2255_s1 + $0x320] sm:$0xff]  ;;  %v121_v20 = vld [vmem:[%s2255_s1 + $0x328] sm:$0xff]  ;;  %v1505_v21 = vpack.c.bf16 %v89_v14, %v88_v12  ;;  %v138_v22 = vld [vmem:[%s2255_s1 + $0x3b0] sm:$0xff]  ;;  %v1507_v24 = vpack.c.bf16 %v107_v17, %v106_v16 }
  0x20   :  { %1490 = vmatpush3.bf16.msra.mxu1 %v1489_v40  ;;  %v139_v23 = vld [vmem:[%s2255_s1 + $0x3b8] sm:$0xff]  ;;  %v90_v25 = vld [vmem:[%s2255_s1 + $0x230] sm:$0xff]  ;;  %v108_v29 = vld [vmem:[%s2255_s1 + $0x2c0] sm:$0xff] }
  0x21   :  { %1492 = vmatprep.subr.bf16.mxu1 %v1491_v44  ;;  %v91_v26 = vld [vmem:[%s2255_s1 + $0x238] sm:$0xff]  ;;  %v122_v28 = vld [vmem:[%s2255_s1 + $0x330] sm:$0xff]  ;;  %v109_v30 = vld [vmem:[%s2255_s1 + $0x2c8] sm:$0xff]  ;;  %v1539_v31 = vpack.c.bf16 %v139_v23, %v138_v22 }
  0x22   :  { %1462 = vmatpush3.bf16.msra.mxu0 %v1461_v47  ;;  %v123_v32 = vld [vmem:[%s2255_s1 + $0x338] sm:$0xff]  ;;  %v19_v33 = vld [vmem:[%s2254_s0 + $0x8] sm:$0xff] }
  0x23   :  { %1496 = vmatprep.subr.bf16.mxu0 %v1495_v50 }
  0x24   :  { %1494 = vmatpush3.bf16.msra.mxu1 %v1493_v53 }
  0x25   :  { %262 = vmatmul.mubr.f32.vlgmr.msra.gmra.mrb[0].mxu0 %v162_v27  ;;  %1528 = vmatprep.subr.bf16.mxu1 %v1527_v56  ;;  %v1537_v27 = vpack.c.bf16 %v121_v20, %v120_v19 }
  0x26   :  { %1498 = vmatpush3.bf16.msra.mxu0 %v1497_v59 }
  0x27   :  { %332 = vmatmul.mubr.f32.vlgmr.msra.gmra.mrb[0].mxu1 %v169_v36  ;;  %1500 = vmatprep.subr.bf16.mxu0 %v1499_v62 }
  0x28   :  { %1530 = vmatpush3.bf16.msra.mxu1 %v1529_v2 }
  0x29   :  { %1532 = vmatprep.subr.bf16.mxu1 %v1531_v5 }
  0x2a   :  { %1502 = vmatpush3.bf16.msra.mxu0 %v1501_v8 }
  0x2b   :  { %1504 = vmatprep.subr.bf16.mxu0 %v1503_v11 }
  0x2c   :  { %1534 = vmatpush3.bf16.msra.mxu1 %v1533_v15 }
  0x2d   :  { %1536 = vmatprep.subr.bf16.mxu1 %v1535_v18 }
  0x2e   :  { %9 = vsyncpa [#allocation3], 0  ;;  %1506 = vmatpush3.bf16.msra.mxu0 %v1505_v21  ;;  %v1509_v34 = vpack.c.bf16 %v91_v26, %v90_v25  ;;  %v140_v35 = vld [vmem:[%s2255_s1 + $0x3c0] sm:$0xff]  ;;  %v141_v36 = vld [vmem:[%s2255_s1 + $0x3c8] sm:$0xff]  ;;  %v2006_v37 = vrot.slane %v19_v33, %v1839_v13  ;;  %v172_v38 = vcombine.high %v19_v33, %v19_v33  ;;  %v1511_v39 = vpack.c.bf16 %v109_v30, %v108_v29  ;;  %s1659_s21 = smov 64   ;;  %s1660_s2 = smov 32  }
  0x2f   :  { %1508 = vmatprep.subr.bf16.mxu0 %v1507_v24  ;;  %v92_v40 = vld [vmem:[%s2255_s1 + $0x240] sm:$0xff]  ;;  %v93_v41 = vld [vmem:[%s2255_s1 + $0x248] sm:$0xff]  ;;  %v1541_v42 = vpack.c.bf16 %v123_v32, %v122_v28  ;;  %v110_v43 = vld [vmem:[%s2255_s1 + $0x2d0] sm:$0xff]  ;;  %v1543_v47 = vpack.c.bf16 %v141_v36, %v140_v35  ;;  %v1656_v32 = vmov 0.0|0.0   ;;  %vm1657_vm1 = vmmov 0   ;;  %s1661_s24 = smov 96  }
  0x30   :  { %1538 = vmatpush3.bf16.msra.mxu1 %v1537_v27  ;;  %v111_v44 = vld [vmem:[%s2255_s1 + $0x2d8] sm:$0xff]  ;;  %v187_v45 = vcombine.high %v2006_v37, %v2006_v37  ;;  %v186_v46 = vrot.slane %v172_v38, %v1839_v13  ;;  %v124_v48 = vld [vmem:[%s2255_s1 + $0x340] sm:$0xff]  ;;  %v125_v49 = vld [vmem:[%s2255_s1 + $0x348] sm:$0xff]  ;;  %v1513_v50 = vpack.c.bf16 %v93_v41, %v92_v40  ;;  %v1658_v36 = vmov 0.0   ;;  %s1662_s26 = smov [#allocation2]  }
  0x31   :  { %1540 = vmatprep.subr.bf16.mxu1 %v1539_v31  ;;  %v142_v51 = vld [vmem:[%s2255_s1 + $0x3d0] sm:$0xff]  ;;  %v143_v13 = vld [vmem:[%s2255_s1 + $0x3d8] sm:$0xff]  ;;  %v1515_v53 = vpack.c.bf16 %v111_v44, %v110_v43  ;;  %v1545_v56 = vpack.c.bf16 %v125_v49, %v124_v48  ;;  %v112_v57 = vld [vmem:[%s2255_s1 + $0x2e0] sm:$0xff]  ;;  %vm595_vm2 = vcmask 261120   ;;  %vm513_vm3 = vcmask 64512   ;;  %s1171_s27 = sshll.u32 %s1662_s26, 4  ;;  %s1172_s27 = int_to_ptr.vmem [resolvable:$true] %s1171_s27 }
  0x32   :  { %1510 = vmatpush3.bf16.msra.mxu0 %v1509_v34  ;;  %401 = vmatprep.mubr.f32.mxu0 %v187_v45  ;;  %v188_v52 = vcombine.high %v186_v46, %v186_v46  ;;  %v94_v54 = vld [vmem:[%s2255_s1 + $0x250] sm:$0xff]  ;;  %v95_v55 = vld [vmem:[%s2255_s1 + $0x258] sm:$0xff]  ;;  %v113_v58 = vld [vmem:[%s2255_s1 + $0x2e8] sm:$0xff]  ;;  %v1547_v59 = vpack.c.bf16 %v143_v13, %v142_v51  ;;  %vm920_vm4 = vcmask 1041408   ;;  %vm922_vm5 = vcmask 1043456   ;;  %s1631_s28 = scalar_lea.vmem %s1172_s27, 128  ;;  %p1636_p1 = scmp.lt.s32.totalorder %s1172_s27, %s1172_s27 }
  0x33   :  { %1512 = vmatprep.subr.bf16.mxu0 %v1511_v39  ;;  %v126_v60 = vld [vmem:[%s2255_s1 + $0x350] sm:$0xff]  ;;  %v127_v61 = vld [vmem:[%s2255_s1 + $0x358] sm:$0xff]  ;;  %v1517_v62 = vpack.c.bf16 %v95_v55, %v94_v54  ;;  %v144_v63 = vld [vmem:[%s2255_s1 + $0x3e0] sm:$0xff]  ;;  %v1519_v2 = vpack.c.bf16 %v113_v58, %v112_v57  ;;  %vm924_vm6 = vcmask 1045504   ;;  %vm933_vm7 = vcmask 326656   ;;  %p1632_p0 = scmp.ne.s32.totalorder %s1172_s27, %s1631_s28  ;;  %p1637_p2 = scmp.lt.s32.totalorder %s1631_s28, %s1631_s28 }
  0x34   :  { %1542 = vmatpush3.bf16.msra.mxu1 %v1541_v42  ;;  %471 = vmatprep.mubr.f32.mxu1 %v188_v52  ;;  %v145_v1 = vld [vmem:[%s2255_s1 + $0x3e8] sm:$0xff]  ;;  %v96_v3 = vld [vmem:[%s2255_s1 + $0x260] sm:$0xff]  ;;  %v1549_v5 = vpack.c.bf16 %v127_v61, %v126_v60  ;;  %v114_v6 = vld [vmem:[%s2255_s1 + $0x2f0] sm:$0xff]  ;;  %vm1163_vm8 = vcmask 130048  }
  0x35   :  { %1544 = vmatprep.subr.bf16.mxu1 %v1543_v47  ;;  %v97_v4 = vld [vmem:[%s2255_s1 + $0x268] sm:$0xff]  ;;  %v115_v7 = vld [vmem:[%s2255_s1 + $0x2f8] sm:$0xff]  ;;  %v1551_v8 = vpack.c.bf16 %v145_v1, %v144_v63  ;;  %v128_v9 = vld [vmem:[%s2255_s1 + $0x360] sm:$0xff]  ;;  %p1638_p3 = por %p1637_p2, %p1636_p1 }
  0x36   :  { %1514 = vmatpush3.bf16.msra.mxu0 %v1513_v50  ;;  %v129_v10 = vld [vmem:[%s2255_s1 + $0x368] sm:$0xff]  ;;  %v1521_v11 = vpack.c.bf16 %v97_v4, %v96_v3  ;;  %v146_v12 = vld [vmem:[%s2255_s1 + $0x3f0] sm:$0xff]  ;;  %v147_v14 = vld [vmem:[%s2255_s1 + $0x3f8] sm:$0xff]  ;;  %v1523_v15 = vpack.c.bf16 %v115_v7, %v114_v6 }
  0x37   :  { %1516 = vmatprep.subr.bf16.mxu0 %v1515_v53  ;;  %v98_v16 = vld [vmem:[%s2255_s1 + $0x270] sm:$0xff]  ;;  %v99_v17 = vld [vmem:[%s2255_s1 + $0x278] sm:$0xff]  ;;  %v1553_v18 = vpack.c.bf16 %v129_v10, %v128_v9  ;;  %v1555_v19 = vpack.c.bf16 %v147_v14, %v146_v12  ;;  %v586_v28 = vld [vmem:[%s2257_s3 + $0x28] sm:$0xff]  ;;  %p1639_p4 = pnand %p1638_p3, %p1632_p0 }
  0x38   :  { %1546 = vmatpush3.bf16.msra.mxu1 %v1545_v56  ;;  %v130_v20 = vld [vmem:[%s2255_s1 + $0x370] sm:$0xff]  ;;  %v131_v21 = vld [vmem:[%s2255_s1 + $0x378] sm:$0xff]  ;;  %v1525_v22 = vpack.c.bf16 %v99_v17, %v98_v16  ;;  %v589_v34 = vld [vmem:[%s2257_s3 + $0x40] sm:$0xff] }
  0x39   :  { %1548 = vmatprep.subr.bf16.mxu1 %v1547_v59  ;;  %v1557_v23 = vpack.c.bf16 %v131_v21, %v130_v20  ;;  %v587_v29 = vld [vmem:[%s2257_s3 + $0x30] sm:$0xff]  ;;  %v588_v33 = vld [vmem:[%s2257_s3 + $0x38] sm:$0xff]  ;;  %v1179_v39 = vld [vmem:[%s2257_s3] ss:$0 sm:$0xff] }
  0x3a   :  { %1518 = vmatpush3.bf16.msra.mxu0 %v1517_v62  ;;  %v1560_v31 = vpack.c.bf16 %v587_v29, %v586_v28  ;;  %v1563_v35 = vpack.c.bf16 %v589_v34, %v588_v33  ;;  %v1180_v58 = vld [vmem:[%s2257_s3 + $0x8] ss:$0 sm:$0xff]  ;;  %v1181_v60 = vld [vmem:[%s2257_s3 + $0x10] ss:$0 sm:$0xff]  ;;  %v1182_v7 = vld [vmem:[%s2257_s3 + $0x20] ss:$0 sm:$0xff] }
  0x3b   :  { %1520 = vmatprep.subr.bf16.mxu0 %v1519_v2  ;;  %v2146_v1 = vld [vmem:[%s2257_s3 + $0x48] ss:$0 sm:$0xff] }
  0x3c   :  { %1550 = vmatpush3.bf16.msra.mxu1 %v1549_v5 }
  0x3d   :  { %1552 = vmatprep.subr.bf16.mxu1 %v1551_v8 }
  0x3e   :  { %1522 = vmatpush3.bf16.msra.mxu0 %v1521_v11 }
  0x3f   :  { %1524 = vmatprep.subr.bf16.mxu0 %v1523_v15 }
  0x40   :  { %1554 = vmatpush3.bf16.msra.mxu1 %v1553_v18 }
  0x41   :  { %1556 = vmatprep.subr.bf16.mxu1 %v1555_v19 }
  0x42   :  { %1526 = vmatpush3.bf16.msra.mxu0 %v1525_v22 }
  0x43   :  { %1369 = vmatprep.subr.mxu0 %v1658_v36 }
  0x44   :  { %1558 = vmatpush3.bf16.msra.mxu1 %v1557_v23 }
  0x45   :  { %402 = vmatmul.mubr.f32.vlgmr.msra.gmra.mrb[2].mxu0 %v2006_v37  ;;  %1559 = vmatprep.subr.bf16.mxu1 %v1656_v32  ;;  %v505_v37 = vld [vmem:[%s2257_s3 + $0x18] sm:$0xff] }
  0x46   :  { %1371 = vmatprep.mubr.msk.f32.mxu0 %vm1657_vm1, %v1658_v36  ;;  %1370 = vmatpush3.msra.mxu0 %v505_v37 }
  0x47   :  { %472 = vmatmul.mubr.f32.vlgmr.msra.gmra.mrb[2].mxu1 %v186_v46  ;;  %1565 = vmatprep.subr.bf16.mxu0 %v1656_v32 }
  0x48   :  { %1561 = vmatpush3.bf16.msra.mxu1 %v1560_v31  ;;  %1382 = vmatprep.mubr.msk.f32.mxu1 %vm1657_vm1, %v1658_v36 }
  0x49   :  { %1562 = vmatprep.subr.bf16.mxu1 %v1656_v32 }
  0x4c   :  { %1564 = vmatpush3.bf16.msra.mxu1 %v1563_v35 }
  0x4d   :  { %1571 = vmatprep.subr.bf16.mxu1 %v1656_v32 }
  0x90   :  { %v483_v24 = vpop.xlane.xlu0 %482 }
  0x91   :  { %v485_v25 = vmul.f32 0.125, %v483_v24 }
  0x93   :  { %v486_v26 = vsub.f32 %v1691_v0, %v485_v25 }
  0x95   :  { %v487_v27 = vmul.f32 %v486_v26, %v486_v26 }
  0x97   :  { %v488_v30 = vsel %vm480_vm0, %v487_v27, 0.0 }
  0x98   :  { %489 = vadd.xlane.f32.xlu0 %v488_v30 }
  0xf8   :  { %v1233_v38 = vpop.f32.mrb[0].mxu0 }
  0xf9   :  { %v1234_v40 = vpop.f32.mrb[1].mxu0 }
  0xfa   :  { %v1235_v41 = vadd.f32 %v1234_v40, %v1233_v38  ;;  %v1268_v42 = vpop.f32.mrb[0].mxu1 }
  0xfb   :  { %v1269_v43 = vpop.f32.mrb[1].mxu1 }
  0xfc   :  { %v264_v44 = vadd.f32 %v1235_v41, %v1179_v39  ;;  %v1270_v45 = vadd.f32 %v1269_v43, %v1268_v42 }
  0xfe   :  { %v334_v46 = vadd.f32 %v1270_v45, %v264_v44 }
 0x118   :  { %v1303_v47 = vpop.f32.mrb[2].mxu0 }
 0x119   :  { %v1304_v48 = vpop.f32.mrb[3].mxu0 }
 0x11a   :  { %v1305_v49 = vadd.f32 %v1304_v48, %v1303_v47  ;;  %v1338_v50 = vpop.f32.mrb[2].mxu1 }
 0x11b   :  { %v1339_v51 = vpop.f32.mrb[3].mxu1 }
 0x11c   :  { %v404_v13 = vadd.f32 %v1305_v49, %v334_v46  ;;  %v1340_v52 = vadd.f32 %v1339_v51, %v1338_v50 }
 0x11e   :  { %v2125_v53 = vadd.f32 %v1340_v52, %v404_v13 }
 0x120   :  { %1383 = vmatmul.mubr.msk.f32.vlgmr.msra.gmra.mrb[4].mxu1 %vm595_vm2, %v2125_v53 }
 0x121   :  { %1573 = vmatpush3.bf16.msra.mxu1 %v1560_v31  ;;  %1404 = vmatprep.mubr.msk.f32.mxu1 %vm1657_vm1, %v1658_v36 }
 0x122   :  { %1574 = vmatprep.subr.bf16.mxu1 %v1656_v32 }
 0x125   :  { %1576 = vmatpush3.bf16.msra.mxu1 %v1563_v35  ;;  %v490_v54 = vpop.xlane.xlu0 %489 }
 0x126   :  { %1583 = vmatprep.subr.bf16.mxu1 %v1656_v32  ;;  %v491_v55 = vmul.f32 0.125, %v490_v54 }
 0x128   :  { %v492_v56 = vadd.f32 1e-05, %v491_v55 }
 0x12a   :  { %1599 = vrsqrt.f32 %v492_v56 }
 0x134   :  { %v1600_v57 = vpop.eup %1599 }
 0x135   :  { %v494_v59 = vmul.f32 %v1600_v57, %v486_v26 }
 0x137   :  { %v499_v61 = vmul.f32 %v1180_v58, %v494_v59 }
 0x139   :  { %v504_v62 = vadd.f32 %v1181_v60, %v499_v61 }
 0x13b   :  { %v512_v63 = vrot.slane %v504_v62, 2 }
 0x13d   :  { %1372 = vmatmul.mubr.msk.f32.vlgmr.msra.gmra.mrb[4].mxu0 %vm513_vm3, %v512_v63 }
 0x13e   :  { %1567 = vmatpush3.bf16.msra.mxu0 %v1560_v31  ;;  %1393 = vmatprep.mubr.msk.f32.mxu0 %vm1657_vm1, %v1658_v36 }
 0x13f   :  { %1568 = vmatprep.subr.bf16.mxu0 %v1656_v32 }
 0x142   :  { %1570 = vmatpush3.bf16.msra.mxu0 %v1563_v35 }
 0x143   :  { %1577 = vmatprep.subr.bf16.mxu0 %v1656_v32 }
 0x1f3   :  { %v665_v2 = vpop.f32.mrb[4].mxu1 }
 0x1f4   :  { %v666_v3 = vadd.f32 %v2146_v1, %v665_v2  ;;  %v1384_v4 = vpop.f32.mrb[5].mxu1 }
 0x1f6   :  { %677 = vrot.lane.b32.xlu1 %v666_v3, %s1659_s21 }
 0x210   :  { %v582_v5 = vpop.f32.mrb[4].mxu0 }
 0x211   :  { %v1373_v6 = vpop.f32.mrb[5].mxu0  ;;  %v2153_v8 = vadd.f32 %v1182_v7, %v582_v5 }
 0x213   :  { %v669_v9 = vadd.f32 %v666_v3, %v2153_v8 }
 0x215   :  { %v1186_v10 = vmul.f32 -1.442695, %v669_v9 }
 0x217   :  { %1601 = vpow2.f32 %v1186_v10 }
 0x221   :  { %v1602_v11 = vpop.eup %1601 }
 0x222   :  { %v673_v12 = vadd.f32 1.0, %v1602_v11 }
 0x224   :  { %1603 = vrcp.f32 %v673_v12 }
 0x22e   :  { %v1604_v14 = vpop.eup %1603 }
 0x22f   :  { %v687_v21 = vsub.f32 1.0, %v1604_v14 }
 0x268   :  { %v678_v15 = vpop.permute.xlu1 %677 }
 0x269   :  { %v680_v16 = vmul.f32 %v1604_v14, %v678_v15 }
 0x26b   :  { %682 = vrot.lane.b32.xlu1 %v680_v16, %s1659_s21 }
 0x26f   :  { %693 = vrot.lane.b32.xlu1 %v2125_v53, %s1660_s2 }
 0x2dd   :  { %v683_v17 = vpop.permute.xlu1 %682 }
 0x2de   :  { %v685_v18 = vadd.f32 %v683_v17, %v2153_v8 }
 0x2e0   :  { %1605 = vtanh.f32 %v685_v18 }
 0x2e1   :  { %v694_v20 = vpop.permute.xlu1 %693 }
 0x2e2   :  { %v696_v23 = vmul.f32 %v1604_v14, %v694_v20 }
 0x2ea   :  { %v1606_v19 = vpop.eup %1605 }
 0x2eb   :  { %689 = vrot.lane.b32.xlu0 %v1606_v19, %s1661_s24 }
 0x35d   :  { %v690_v22 = vpop.permute.xlu0 %689 }
 0x35e   :  { %v692_v24 = vmul.f32 %v690_v22, %v687_v21 }
 0x360   :  { %v697_v25 = vadd.f32 %v696_v23, %v692_v24  ;;  %v959_v23 = vld [vmem:[%s2257_s3 + $0x68] sm:$0xff] }
 0x362   :  { %699 = vrot.lane.b32.xlu1 %v697_v25, %s1661_s24  ;;  %v799_v43 = vrot.slane %v697_v25, 6  ;;  %v960_v25 = vld [vmem:[%s2257_s3 + $0x70] sm:$0xff] }
 0x3d4   :  { %v700_v26 = vpop.permute.xlu1 %699 }
 0x3d5   :  { %1394 = vmatmul.mubr.msk.f32.vlgmr.msra.gmra.mrb[6].mxu0 %vm595_vm2, %v700_v26  ;;  %v961_v26 = vld [vmem:[%s2257_s3 + $0x78] sm:$0xff] }
 0x3d6   :  { %1417 = vmatprep.mubr.msk.f32.mxu0 %vm1657_vm1, %v1658_v36 }
 0x4a8   :  { %v769_v27 = vpop.f32.mrb[6].mxu0 }
 0x4a9   :  { %v770_v28 = vadd.f32 %v2146_v1, %v769_v27  ;;  %v1395_v29 = vpop.f32.mrb[7].mxu0  ;;  %v1581_v27 = vpack.c.bf16 %v961_v26, %v960_v25 }
 0x4ab   :  { %v774_v30 = vrot.slane %v770_v28, 6  ;;  %v962_v28 = vld [vmem:[%s2257_s3 + $0x80] sm:$0xff] }
 0x4ad   :  { %783 = vrot.lane.b32.xlu1 %v774_v30, %s1659_s21  ;;  %v776_v31 = vadd.f32 %v774_v30, %v2153_v8 }
 0x4af   :  { %v1188_v33 = vmul.f32 -1.442695, %v776_v31 }
 0x4b1   :  { %1607 = vpow2.f32 %v1188_v33 }
 0x4bb   :  { %v1608_v34 = vpop.eup %1607 }
 0x4bc   :  { %v780_v35 = vadd.f32 1.0, %v1608_v34  ;;  %v1191_v34 = vld [vmem:[%s2257_s3 + $0x50] ss:$0 sm:$0xff] }
 0x4be   :  { %1609 = vrcp.f32 %v780_v35 }
 0x4c8   :  { %v1610_v37 = vpop.eup %1609 }
 0x4c9   :  { %v793_v44 = vsub.f32 1.0, %v1610_v37  ;;  %v801_v47 = vmul.f32 %v1610_v37, %v799_v43 }
 0x51f   :  { %v784_v38 = vpop.permute.xlu1 %783 }
 0x520   :  { %v786_v39 = vmul.f32 %v1610_v37, %v784_v38  ;;  %v1192_v37 = vld [vmem:[%s2257_s3 + $0x58] ss:$0 sm:$0xff] }
 0x522   :  { %788 = vrot.lane.b32.xlu1 %v786_v39, %s1659_s21  ;;  %v1193_v39 = vld [vmem:[%s2257_s3 + $0x88] ss:$0 sm:$0xff] }
 0x594   :  { %v789_v40 = vpop.permute.xlu1 %788 }
 0x595   :  { %v791_v41 = vadd.f32 %v789_v40, %v2153_v8 }
 0x597   :  { %1611 = vtanh.f32 %v791_v41 }
 0x5a1   :  { %v1612_v42 = vpop.eup %1611 }
 0x5a2   :  { %795 = vrot.lane.b32.xlu1 %v1612_v42, %s1661_s24 }
 0x614   :  { %v796_v45 = vpop.permute.xlu1 %795 }
 0x615   :  { %v798_v46 = vmul.f32 %v796_v45, %v793_v44 }
 0x617   :  { %v802_v48 = vadd.f32 %v801_v47, %v798_v46 }
 0x619   :  { %v804_v49 = vrot.slane %v802_v48, 2  ;;  %v905_v2 = vrot.slane %v802_v48, 6 }
 0x61b   :  { %805 = vrot.lane.b32.xlu1 %v804_v49, %s1661_s24 }
 0x68d   :  { %v806_v50 = vpop.permute.xlu1 %805 }
 0x68e   :  { %1405 = vmatmul.mubr.msk.f32.vlgmr.msra.gmra.mrb[6].mxu1 %vm595_vm2, %v806_v50 }
 0x68f   :  { %1428 = vmatprep.mubr.msk.f32.mxu1 %vm1657_vm1, %v1658_v36 }
 0x761   :  { %v875_v51 = vpop.f32.mrb[6].mxu1 }
 0x762   :  { %v876_v13 = vadd.f32 %v2146_v1, %v875_v51  ;;  %v1406_v52 = vpop.f32.mrb[7].mxu1 }
 0x764   :  { %v880_v54 = vrot.slane %v876_v13, 4 }
 0x766   :  { %889 = vrot.lane.b32.xlu0 %v880_v54, %s1659_s21  ;;  %v882_v55 = vadd.f32 %v880_v54, %v2153_v8  ;;  %v1074_v54 = vld [vmem:[%s2257_s3 + $0xa0] sm:$0xff] }
 0x768   :  { %v1190_v56 = vmul.f32 -1.442695, %v882_v55  ;;  %v1075_v55 = vld [vmem:[%s2257_s3 + $0xa8] sm:$0xff] }
 0x76a   :  { %1613 = vpow2.f32 %v1190_v56  ;;  %v1584_v56 = vpack.c.bf16 %v1075_v55, %v1074_v54 }
 0x76c   :  { %1585 = vmatpush3.bf16.msra.mxu1 %v1584_v56 }
 0x76d   :  { %1586 = vmatprep.subr.bf16.mxu1 %v1656_v32 }
 0x774   :  { %v1614_v57 = vpop.eup %1613 }
 0x775   :  { %v886_v58 = vadd.f32 1.0, %v1614_v57  ;;  %v1076_v57 = vld [vmem:[%s2257_s3 + $0xb0] sm:$0xff] }
 0x777   :  { %1615 = vrcp.f32 %v886_v58  ;;  %v1077_v58 = vld [vmem:[%s2257_s3 + $0xb8] sm:$0xff] }
 0x781   :  { %v1616_v59 = vpop.eup %1615 }
 0x782   :  { %v899_v3 = vsub.f32 1.0, %v1616_v59  ;;  %v907_v5 = vmul.f32 %v1616_v59, %v905_v2 }
 0x7d8   :  { %v890_v60 = vpop.permute.xlu0 %889 }
 0x7d9   :  { %v892_v61 = vmul.f32 %v1616_v59, %v890_v60  ;;  %v1587_v59 = vpack.c.bf16 %v1077_v58, %v1076_v57 }
 0x7db   :  { %894 = vrot.lane.b32.xlu1 %v892_v61, %s1659_s21  ;;  %1588 = vmatpush3.bf16.msra.mxu1 %v1587_v59 }
 0x7df   :  { %909 = vrot.lane.b32.xlu1 %v799_v43, %s1661_s24 }
 0x84d   :  { %v895_v62 = vpop.permute.xlu1 %894 }
 0x84e   :  { %v897_v63 = vadd.f32 %v895_v62, %v2153_v8 }
 0x850   :  { %1617 = vtanh.f32 %v897_v63 }
 0x851   :  { %v910_v8 = vpop.permute.xlu1 %909 }
 0x852   :  { %v921_v11 = vsel %vm920_vm4, %v2125_v53, %v910_v8  ;;  %v958_v53 = vld [vmem:[%s2257_s3 + $0x60] sm:$0xff] }
 0x853   :  { %v1578_v24 = vpack.c.bf16 %v959_v23, %v958_v53 }
 0x855   :  { %1579 = vmatpush3.bf16.msra.mxu0 %v1578_v24 }
 0x856   :  { %1580 = vmatprep.subr.bf16.mxu0 %v1656_v32 }
 0x859   :  { %1582 = vmatpush3.bf16.msra.mxu0 %v1581_v27 }
 0x85a   :  { %v1618_v1 = vpop.eup %1617  ;;  %1415 = vmatprep.subr.mxu0 %v1658_v36 }
 0x85b   :  { %901 = vrot.lane.b32.xlu0 %v1618_v1, %s1661_s24  ;;  %v1196_v1 = vld [vmem:[%s2257_s3 + $0x90] ss:$0 sm:$0xff] }
 0x85d   :  { %1416 = vmatpush3.msra.mxu0 %v962_v28 }
 0x85f   :  { %912 = vrot.lane.b32.xlu0 %v905_v2, %s1661_s24  ;;  %v1197_v2 = vld [vmem:[%s2257_s3 + $0x98] ss:$0 sm:$0xff] }
 0x863   :  { %927 = vrot.lane.b32.xlu0 %v1691_v0, %s1660_s2 }
 0x8cd   :  { %v902_v4 = vpop.permute.xlu0 %901 }
 0x8ce   :  { %v904_v6 = vmul.f32 %v902_v4, %v899_v3 }
 0x8d0   :  { %v908_v7 = vadd.f32 %v907_v5, %v904_v6  ;;  %v1198_v5 = vld [vmem:[%s2257_s3 + $0xc0] ss:$0 sm:$0xff] }
 0x8d1   :  { %v913_v10 = vpop.permute.xlu0 %912 }
 0x8d2   :  { %v916_v9 = vrot.slane %v908_v7, 6  ;;  %v923_v14 = vsel %vm922_vm5, %v921_v11, %v913_v10 }
 0x8d4   :  { %917 = vrot.lane.b32.xlu1 %v916_v9, %s1661_s24 }
 0x8d5   :  { %v928_v12 = vpop.permute.xlu0 %927 }
 0x946   :  { %v918_v15 = vpop.permute.xlu1 %917 }
 0x947   :  { %v925_v0 = vsel %vm924_vm6, %v923_v14, %v918_v15 }
 0x948   :  { %v930_v16 = vsel %vm595_vm2, %v925_v0, %v928_v12 }
 0x949   :  { %v934_v17 = vsel %vm933_vm7, %v930_v16, 0.0 }
 0x94a   :  { %935 = vadd.xlane.f32.xlu1 %v934_v17 }
 0x9d7   :  { %v936_v18 = vpop.xlane.xlu1 %935 }
 0x9d8   :  { %v938_v19 = vmul.f32 0.025, %v936_v18 }
 0x9da   :  { %v939_v20 = vsub.f32 %v930_v16, %v938_v19 }
 0x9dc   :  { %v940_v21 = vmul.f32 %v939_v20, %v939_v20 }
 0x9de   :  { %v941_v22 = vsel %vm933_vm7, %v940_v21, 0.0 }
 0x9df   :  { %942 = vadd.xlane.f32.xlu0 %v941_v22 }
 0xa6c   :  { %v943_v29 = vpop.xlane.xlu0 %942 }
 0xa6d   :  { %v944_v30 = vmul.f32 0.025, %v943_v29 }
 0xa6f   :  { %v945_v31 = vadd.f32 1e-05, %v944_v30 }
 0xa71   :  { %1619 = vrsqrt.f32 %v945_v31 }
 0xa7b   :  { %v1620_v33 = vpop.eup %1619 }
 0xa7c   :  { %v947_v35 = vmul.f32 %v1620_v33, %v939_v20 }
 0xa7e   :  { %v952_v36 = vmul.f32 %v1191_v34, %v947_v35 }
 0xa80   :  { %v957_v38 = vadd.f32 %v1192_v37, %v952_v36 }
 0xa82   :  { %1418 = vmatmul.mubr.msk.f32.vlgmr.msra.gmra.mrb[8].mxu0 %vm933_vm7, %v957_v38 }
 0xb55   :  { %v1037_v40 = vpop.f32.mrb[8].mxu0 }
 0xb56   :  { %v1038_v41 = vadd.f32 %v1193_v39, %v1037_v40  ;;  %v1419_v42 = vpop.f32.mrb[9].mxu0 }
 0xb58   :  { %v1195_v43 = vmul.f32 -1.442695, %v1038_v41 }
 0xb5a   :  { %1621 = vpow2.f32 %v1195_v43 }
 0xb64   :  { %v1622_v44 = vpop.eup %1621 }
 0xb65   :  { %v1044_v45 = vadd.f32 1.0, %v1622_v44 }
 0xb67   :  { %1623 = vrcp.f32 %v1044_v45 }
 0xb71   :  { %v1624_v46 = vpop.eup %1623 }
 0xb72   :  { %v1047_v47 = vmul.f32 %v1624_v46, %v1038_v41 }
 0xb74   :  { %v1050_v48 = vsel %vm595_vm2, %v1047_v47, 0.0 }
 0xb75   :  { %1051 = vadd.xlane.f32.xlu0 %v1050_v48 }
 0xc02   :  { %v1052_v49 = vpop.xlane.xlu0 %1051 }
 0xc03   :  { %v1054_v50 = vmul.f32 0.03125, %v1052_v49 }
 0xc05   :  { %v1055_v51 = vsub.f32 %v1047_v47, %v1054_v50 }
 0xc07   :  { %v1056_v13 = vmul.f32 %v1055_v51, %v1055_v51 }
 0xc09   :  { %v1057_v52 = vsel %vm595_vm2, %v1056_v13, 0.0 }
 0xc0a   :  { %1058 = vadd.xlane.f32.xlu1 %v1057_v52 }
 0xc97   :  { %v1059_v60 = vpop.xlane.xlu1 %1058 }
 0xc98   :  { %v1060_v61 = vmul.f32 0.03125, %v1059_v60 }
 0xc9a   :  { %v1061_v62 = vadd.f32 1e-05, %v1060_v61 }
 0xc9c   :  { %1625 = vrsqrt.f32 %v1061_v62 }
 0xca6   :  { %v1626_v63 = vpop.eup %1625 }
 0xca7   :  { %v1063_v32 = vmul.f32 %v1626_v63, %v1055_v51 }
 0xca9   :  { %v1068_v3 = vmul.f32 %v1196_v1, %v1063_v32 }
 0xcab   :  { %v1073_v4 = vadd.f32 %v1197_v2, %v1068_v3 }
 0xcad   :  { %1429 = vmatmul.mubr.msk.f32.vlgmr.msra.gmra.mrb[8].mxu1 %vm595_vm2, %v1073_v4 }
 0xd80   :  { %v1152_v6 = vpop.f32.mrb[8].mxu1 }
 0xd81   :  { %v1153_v7 = vadd.f32 %v1198_v5, %v1152_v6  ;;  %v1430_v9 = vpop.f32.mrb[9].mxu1 }
 0xd83   :  { %v1200_v10 = vmul.f32 -1.442695, %v1153_v7 }
 0xd85   :  { %1627 = vpow2.f32 %v1200_v10 }
 0xd8f   :  { %v1628_v8 = vpop.eup %1627 }
 0xd90   :  { %v1159_v11 = vadd.f32 1.0, %v1628_v8 }
 0xd92   :  { %1629 = vrcp.f32 %v1159_v11 }
 0xd9c   :  { %v1630_v12 = vpop.eup %1629 }
 0xd9d   :  { %v1162_v14 = vmul.f32 %v1630_v12, %v1153_v7 }
 0xd9f   :  { %1164 = vst.msk [vmem:[#allocation2] sm:$0xff] %vm1163_vm8, %v1162_v14 }
 0xda0   :  { %1642 = shalt.err (!%p1639_p4)
}
 0xda1   :  { %s1643_s30 = scalar_lea.hbm %s2258_s4, 128 }
 0xda2   :  { %p1644_p5 = scmp.ne.s32.totalorder %s2258_s4, %s1643_s30  ;;  %p1647_p6 = scmp.lt.u32.totalorder %s1643_s30, %s2258_s4 }
 0xda4   :  { %p1649_p7 = pnand %p1647_p6, %p1644_p5 }
 0xda6   :  { %1652 = shalt.err (!%p1649_p7)
}
 0xda7   :  { %1174 = dma.vmem_to_hbm [thread:$0]  %s1172_s27, 128, %s2258_s4, [#allocation3]  }
 0xda8   :  { %1653 = dma.done.wait [#allocation3], 128  }
 0xda9   :  { %1654 = vsyncadd [#allocation3], 4294967168 }
 0xdaa   :  { %1178 = vsyncpa [#allocation3], 1 }

</bundles_post_ra>
